<compile_context>
chip_gen: v6e
topology: v6e:2x2x1
jax: 0.10.0
libtpu: 0.0.40
codegen_flags: <defaults>
</compile_context>

<pallas_src>
import jax
import jax.numpy as jnp
from jax.experimental import pallas as pl
from jax.experimental.pallas import tpu as pltpu


_XG_SSA_MAX_BYTES = 64 * 1024  # ~16 vregs: keep the pre-projection in vregs below this


def _round_up(a, m):
    return ((a + m - 1) // m) * m


def _pick_bt(B):
    """Batch tile: sublane-aligned, up to 128 MXU rows, >=2 grid steps when possible."""
    Bp8 = _round_up(B, 8)
    if Bp8 <= 8:
        return 8
    return min(128, _round_up(pl.cdiv(Bp8, 2), 8))


def _make_decoder_kernel(T, bt, H, use_scratch):
    H3 = 3 * H

    def gate_step(pre, h, c, whh):
        # gates columns are (i | f | o | g) after the wrapper-side permutation.
        gates = pre + jnp.dot(h, whh, preferred_element_type=jnp.float32)
        ifo = jax.nn.sigmoid(gates[:, :H3])       # one EUP stream for i, f, o
        g = jnp.tanh(gates[:, H3:])               # one EUP stream for g
        i = ifo[:, :H]
        f = ifo[:, H:2 * H]
        o = ifo[:, 2 * H:H3]
        c_new = f * c + i * g
        h_new = o * jnp.tanh(c_new)
        return h_new, c_new

    def kernel(x_ref, wih_ref, whh_ref, bg_ref, wf1_ref, bf1_ref,
               wf2_ref, b2_ref, out_ref, *scratch):
        # x_ref  : (T*bt, CP)   batch-tile of the permuted input, time-major
        # wih_ref: (CP, 4H)     W_ih^T (gate-permuted, channel-padded)
        # whh_ref: (H, 4H)      W_hh^T (gate-permuted)
        # bg_ref : (1, 4H)      b_ih + b_hh (gate-permuted)
        # wf1_ref: (H, Hh)      fc1 W^T     bf1_ref: (1, Hh) fc1 bias
        # wf2_ref: (1, Hh)      fc2 weight row   b2_ref: (1, 1) fc2 bias (SMEM)
        # out_ref: (1, bt)      lane-dense output row for this batch tile
        whh = whh_ref[...]
        h = jnp.zeros((bt, H), jnp.float32)
        c = jnp.zeros((bt, H), jnp.float32)

        if use_scratch:
            xg_ref = scratch[0]
            # One big MXU matmul: input->hidden projection for every time step.
            xg_ref[...] = (
                jnp.dot(x_ref[...], wih_ref[...],
                        preferred_element_type=jnp.float32)
                + bg_ref[...]
            )

            def body(t, carry):
                hh, cc = carry
                start = pl.multiple_of(t * bt, 8)
                pre = xg_ref[pl.ds(start, bt), :]
                return gate_step(pre, hh, cc, whh)

            h, c = jax.lax.fori_loop(0, T, body, (h, c),
                                     unroll=True if T <= 16 else 4)
        else:
            # Small case: keep the pre-projection as an SSA value so the
            # serial recurrence reads gate pre-activations straight from vregs.
            xg = (
                jnp.dot(x_ref[...], wih_ref[...],
                        preferred_element_type=jnp.float32)
                + bg_ref[...]
            )
            for t in range(T):
                pre = xg[t * bt:(t + 1) * bt, :]
                h, c = gate_step(pre, h, c, whh)

        # fc_out: Linear(H, H/2) -> ReLU -> Linear(H/2, 1).
        f1 = jnp.maximum(
            jnp.dot(h, wf1_ref[...], preferred_element_type=jnp.float32)
            + bf1_ref[...],
            0.0,
        )
        # Lane-dense (1, bt) result row: (1, Hh) x (bt, Hh)^T on the MXU.
        row = pl.dot(wf2_ref[...], f1, trans_b=True)     # (1, bt) f32
        out_ref[...] = row + b2_ref[0, 0]

    return kernel


def decoder_forward(x, wih, whh, bih, bhh, wf1, bf1, wf2, bf2):
    """x: (B, C, T) as the PyTorch module receives it. Returns (B, 1).

    Parameters use PyTorch layouts: wih (4H, C), whh (4H, H), biases (4H,),
    wf1 (Hh, H), bf1 (Hh,), wf2 (1, Hh), bf2 (1,).
    """
    B, C, T = x.shape
    H = whh.shape[1]
    Hh = wf1.shape[0]

    bt = _pick_bt(B)
    Bp = _round_up(B, bt)
    nb = Bp // bt
    CP = _round_up(C, 8)  # pad channels so x-tile rows are 32B-aligned

    # Permute gate columns from PyTorch (i, f, g, o) to (i, f, o, g) so one
    # sigmoid covers the contiguous [0:3H] slice. Weights + bias are permuted
    # identically, so results match the reference exactly.
    perm = jnp.concatenate([
        jnp.arange(0, 2 * H), jnp.arange(3 * H, 4 * H), jnp.arange(2 * H, 3 * H)
    ])
    wih_t = jnp.pad(wih.T.astype(jnp.float32), ((0, CP - C), (0, 0)))[:, perm]
    whh_t = whh.T.astype(jnp.float32)[:, perm]
    bg = (bih + bhh).astype(jnp.float32)[perm].reshape(1, 4 * H)
    wf1_t = wf1.T.astype(jnp.float32)              # (H, Hh)
    bf1_r = bf1.astype(jnp.float32).reshape(1, Hh)
    wf2_r = wf2.astype(jnp.float32).reshape(1, Hh)
    b2 = bf2.astype(jnp.float32).reshape(1, 1)

    # (B, C, T) -> (T, B, C)  (== x.permute(2, 0, 1)), pad batch & channels,
    # then lay out each batch tile's full sequence contiguously:
    # (nb, T*bt, CP) where row t*bt + j of tile b is time t of batch b*bt + j.
    xt = jnp.transpose(x, (2, 0, 1)).astype(jnp.float32)
    xt = jnp.pad(xt, ((0, 0), (0, Bp - B), (0, CP - C)))
    xt = xt.reshape(T, nb, bt, CP).transpose(1, 0, 2, 3).reshape(nb, T * bt, CP)

    use_scratch = (T * bt * 4 * H * 4) > _XG_SSA_MAX_BYTES
    scratch_shapes = (
        [pltpu.VMEM((T * bt, 4 * H), jnp.float32)] if use_scratch else []
    )
    # NOTE: for large model configs re-check T*bt*4H*4 bytes + double-buffered
    # x tiles against the VMEM budget (v7x has 64 MiB physical VMEM).

    kernel = _make_decoder_kernel(T, bt, H, use_scratch)

    out = pl.pallas_call(
        kernel,
        out_shape=jax.ShapeDtypeStruct((nb, 1, bt), jnp.float32),
        grid=(nb,),
        in_specs=[
            pl.BlockSpec((None, T * bt, CP), lambda b: (b, 0, 0)),  # x tile
            pl.BlockSpec((CP, 4 * H), lambda b: (0, 0)),            # W_ih^T
            pl.BlockSpec((H, 4 * H), lambda b: (0, 0)),             # W_hh^T
            pl.BlockSpec((1, 4 * H), lambda b: (0, 0)),             # gate bias
            pl.BlockSpec((H, Hh), lambda b: (0, 0)),                # fc1 W^T
            pl.BlockSpec((1, Hh), lambda b: (0, 0)),                # fc1 bias
            pl.BlockSpec((1, Hh), lambda b: (0, 0)),                # fc2 W row
            pl.BlockSpec(memory_space=pltpu.MemorySpace.SMEM),      # fc2 bias
        ],
        out_specs=pl.BlockSpec((None, 1, bt), lambda b: (b, 0, 0)),
        scratch_shapes=scratch_shapes,
        compiler_params=pltpu.CompilerParams(
            dimension_semantics=("parallel",),
        ),
    )(xt, wih_t, whh_t, bg, wf1_t, bf1_r, wf2_r, b2)

    # (nb, 1, bt) -> (Bp, 1), row k corresponds to batch index k; drop padding.
    return out.reshape(Bp, 1)[:B]


def reference_forward(x, wih, whh, bih, bhh, wf1, bf1, wf2, bf2):
    """Pure-JAX reference matching the PyTorch Decoder.forward (1-layer LSTM)."""
    B, C, T = x.shape
    H = whh.shape[1]
    xs = jnp.transpose(x, (2, 0, 1))  # (T, B, C)

    def step(carry, x_t):
        h, c = carry
        gates = x_t @ wih.T + bih + h @ whh.T + bhh
        i, f, g, o = jnp.split(gates, 4, axis=-1)
        i = jax.nn.sigmoid(i)
        f = jax.nn.sigmoid(f)
        g = jnp.tanh(g)
        o = jax.nn.sigmoid(o)
        c = f * c + i * g
        h = o * jnp.tanh(c)
        return (h, c), h

    (h, _), _ = jax.lax.scan(
        step,
        (jnp.zeros((B, H), jnp.float32), jnp.zeros((B, H), jnp.float32)),
        xs,
    )
    f1 = jax.nn.relu(h @ wf1.T + bf1)  # x_hat[-1] == h_T for 1-layer uni LSTM
    return f1 @ wf2.T + bf2            # (B, 1)


if __name__ == "__main__":
    # Demo config: lstm_input_size=5 (fixed by the module), prediction_horizon=8,
    # de.lstm_hidden_size=32, de.lstm_num_layer=1, de.bidirectional=False.
    B, C, T, H = 2, 5, 8, 32
    Hh = H // 2

    key = jax.random.PRNGKey(0)
    ks = jax.random.split(key, 10)

    # PyTorch parameter layouts: LSTM weight_ih (4H, C), weight_hh (4H, H),
    # biases (4H,); fc1 (Hh, H) + (Hh,); fc2 (1, Hh) + (1,).
    wih = jax.random.uniform(ks[0], (4 * H, C), jnp.float32, -0.1, 0.1)
    whh = jax.random.uniform(ks[1], (4 * H, H), jnp.float32, -0.1, 0.1)
    bih = jax.random.uniform(ks[2], (4 * H,), jnp.float32, -0.1, 0.1)
    bhh = jax.random.uniform(ks[3], (4 * H,), jnp.float32, -0.1, 0.1)
    wf1 = jax.random.uniform(ks[4], (Hh, H), jnp.float32, -0.2, 0.2)
    bf1 = jax.random.uniform(ks[5], (Hh,), jnp.float32, -0.2, 0.2)
    wf2 = jax.random.uniform(ks[6], (1, Hh), jnp.float32, -0.2, 0.2)
    bf2 = jax.random.uniform(ks[7], (1,), jnp.float32, -0.2, 0.2)

    x = jax.random.normal(ks[8], (B, C, T), jnp.float32)
    his = jax.random.normal(ks[9], (B, C, T), jnp.float32)  # unused by forward

    out = decoder_forward(x, wih, whh, bih, bhh, wf1, bf1, wf2, bf2)
    out = jax.block_until_ready(out)

    ref = reference_forward(x, wih, whh, bih, bhh, wf1, bf1, wf2, bf2)
    assert out.shape == (B, 1), out.shape
    assert jnp.allclose(out, ref, atol=1e-5, rtol=1e-5), float(
        jnp.max(jnp.abs(out - ref))
    )

    print("KERNEL_OK")
</pallas_src>

<mosaic_0001>
module attributes {stable_mosaic.version = 11 : i64} {
  func.func @kernel(%arg0: i32, %arg1: memref<1x64x8xf32, #tpu.memory_space<vmem>>, %arg2: memref<8x128xf32, #tpu.memory_space<vmem>>, %arg3: memref<32x128xf32, #tpu.memory_space<vmem>>, %arg4: memref<1x128xf32, #tpu.memory_space<vmem>>, %arg5: memref<32x16xf32, #tpu.memory_space<vmem>>, %arg6: memref<1x16xf32, #tpu.memory_space<vmem>>, %arg7: memref<1x16xf32, #tpu.memory_space<vmem>>, %arg8: memref<1x1xf32, #tpu.memory_space<smem>>, %arg9: memref<1x1x8xf32, #tpu.memory_space<vmem>>) attributes {dimension_semantics = [#tpu.dimension_semantics<parallel>], iteration_bounds = array<i64: 1>, scalar_prefetch = 0 : i64, scratch_operands = 0 : i64, tpu.core_type = #tpu.core_type<tc>, window_params = [{transform_indices = @transform_0, window_bounds = array<i64: 1, 64, 8>}, {pipeline_mode = #tpu.pipeline_mode<synchronous>, transform_indices = @transform_1, window_bounds = array<i64: 8, 128>}, {pipeline_mode = #tpu.pipeline_mode<synchronous>, transform_indices = @transform_2, window_bounds = array<i64: 32, 128>}, {pipeline_mode = #tpu.pipeline_mode<synchronous>, transform_indices = @transform_3, window_bounds = array<i64: 1, 128>}, {pipeline_mode = #tpu.pipeline_mode<synchronous>, transform_indices = @transform_4, window_bounds = array<i64: 32, 16>}, {pipeline_mode = #tpu.pipeline_mode<synchronous>, transform_indices = @transform_5, window_bounds = array<i64: 1, 16>}, {pipeline_mode = #tpu.pipeline_mode<synchronous>, transform_indices = @transform_6, window_bounds = array<i64: 1, 16>}, {transform_indices = @transform_7, window_bounds = array<i64: 1, 1>}, {transform_indices = @transform_8, window_bounds = array<i64: 1, 1, 8>}]} {
    %c0 = arith.constant 0 : index
    %c0_0 = arith.constant 0 : index
    %0 = vector.load %arg3[%c0, %c0_0] : memref<32x128xf32, #tpu.memory_space<vmem>>, vector<32x128xf32>
    %cst = arith.constant 0.000000e+00 : f32
    %1 = vector.broadcast %cst : f32 to vector<8x32xf32>
    %cst_1 = arith.constant 0.000000e+00 : f32
    %2 = vector.broadcast %cst_1 : f32 to vector<8x32xf32>
    %c0_2 = arith.constant 0 : index
    %c0_3 = arith.constant 0 : index
    %c0_4 = arith.constant 0 : index
    %3 = vector.load %arg1[%c0_2, %c0_3, %c0_4] : memref<1x64x8xf32, #tpu.memory_space<vmem>>, vector<1x64x8xf32>
    %4 = vector.shape_cast %3 : vector<1x64x8xf32> to vector<64x8xf32>
    %c0_5 = arith.constant 0 : index
    %c0_6 = arith.constant 0 : index
    %5 = vector.load %arg2[%c0_5, %c0_6] : memref<8x128xf32, #tpu.memory_space<vmem>>, vector<8x128xf32>
    %cst_7 = arith.constant dense<0.000000e+00> : vector<64x128xf32>
    %6 = tpu.matmul %4, %5, %cst_7 {dimension_numbers = #tpu.dot_dimension_numbers<[1], [0], [0], [1], [0, 0, 1, 1], [], []>} : vector<64x8xf32>, vector<8x128xf32>, vector<64x128xf32> -> vector<64x128xf32>
    %c0_8 = arith.constant 0 : index
    %c0_9 = arith.constant 0 : index
    %7 = vector.load %arg4[%c0_8, %c0_9] : memref<1x128xf32, #tpu.memory_space<vmem>>, vector<1x128xf32>
    %8 = vector.broadcast %7 : vector<1x128xf32> to vector<64x128xf32>
    %9 = arith.addf %6, %8 : vector<64x128xf32>
    %10 = vector.extract_strided_slice %9 {offsets = [0, 0], sizes = [8, 128], strides = [1, 1]} : vector<64x128xf32> to vector<8x128xf32>
    %cst_10 = arith.constant dense<0.000000e+00> : vector<8x128xf32>
    %11 = tpu.matmul %1, %0, %cst_10 {dimension_numbers = #tpu.dot_dimension_numbers<[1], [0], [0], [1], [0, 0, 1, 1], [], []>} : vector<8x32xf32>, vector<32x128xf32>, vector<8x128xf32> -> vector<8x128xf32>
    %12 = arith.addf %10, %11 : vector<8x128xf32>
    %13 = vector.extract_strided_slice %12 {offsets = [0, 0], sizes = [8, 96], strides = [1, 1]} : vector<8x128xf32> to vector<8x96xf32>
    %14 = arith.negf %13 : vector<8x96xf32>
    %15 = math.exp %14 : vector<8x96xf32>
    %cst_11 = arith.constant 1.000000e+00 : f32
    %16 = vector.broadcast %cst_11 : f32 to vector<8x96xf32>
    %17 = arith.addf %16, %15 : vector<8x96xf32>
    %18 = arith.divf %16, %17 : vector<8x96xf32>
    %19 = vector.extract_strided_slice %12 {offsets = [0, 96], sizes = [8, 32], strides = [1, 1]} : vector<8x128xf32> to vector<8x32xf32>
    %20 = math.tanh %19 : vector<8x32xf32>
    %21 = vector.extract_strided_slice %18 {offsets = [0, 0], sizes = [8, 32], strides = [1, 1]} : vector<8x96xf32> to vector<8x32xf32>
    %22 = vector.extract_strided_slice %18 {offsets = [0, 32], sizes = [8, 32], strides = [1, 1]} : vector<8x96xf32> to vector<8x32xf32>
    %23 = vector.extract_strided_slice %18 {offsets = [0, 64], sizes = [8, 32], strides = [1, 1]} : vector<8x96xf32> to vector<8x32xf32>
    %24 = arith.mulf %22, %2 : vector<8x32xf32>
    %25 = arith.mulf %21, %20 : vector<8x32xf32>
    %26 = arith.addf %24, %25 : vector<8x32xf32>
    %27 = math.tanh %26 : vector<8x32xf32>
    %28 = arith.mulf %23, %27 : vector<8x32xf32>
    %29 = vector.extract_strided_slice %9 {offsets = [8, 0], sizes = [8, 128], strides = [1, 1]} : vector<64x128xf32> to vector<8x128xf32>
    %cst_12 = arith.constant dense<0.000000e+00> : vector<8x128xf32>
    %30 = tpu.matmul %28, %0, %cst_12 {dimension_numbers = #tpu.dot_dimension_numbers<[1], [0], [0], [1], [0, 0, 1, 1], [], []>} : vector<8x32xf32>, vector<32x128xf32>, vector<8x128xf32> -> vector<8x128xf32>
    %31 = arith.addf %29, %30 : vector<8x128xf32>
    %32 = vector.extract_strided_slice %31 {offsets = [0, 0], sizes = [8, 96], strides = [1, 1]} : vector<8x128xf32> to vector<8x96xf32>
    %33 = arith.negf %32 : vector<8x96xf32>
    %34 = math.exp %33 : vector<8x96xf32>
    %cst_13 = arith.constant 1.000000e+00 : f32
    %35 = vector.broadcast %cst_13 : f32 to vector<8x96xf32>
    %36 = arith.addf %35, %34 : vector<8x96xf32>
    %37 = arith.divf %35, %36 : vector<8x96xf32>
    %38 = vector.extract_strided_slice %31 {offsets = [0, 96], sizes = [8, 32], strides = [1, 1]} : vector<8x128xf32> to vector<8x32xf32>
    %39 = math.tanh %38 : vector<8x32xf32>
    %40 = vector.extract_strided_slice %37 {offsets = [0, 0], sizes = [8, 32], strides = [1, 1]} : vector<8x96xf32> to vector<8x32xf32>
    %41 = vector.extract_strided_slice %37 {offsets = [0, 32], sizes = [8, 32], strides = [1, 1]} : vector<8x96xf32> to vector<8x32xf32>
    %42 = vector.extract_strided_slice %37 {offsets = [0, 64], sizes = [8, 32], strides = [1, 1]} : vector<8x96xf32> to vector<8x32xf32>
    %43 = arith.mulf %41, %26 : vector<8x32xf32>
    %44 = arith.mulf %40, %39 : vector<8x32xf32>
    %45 = arith.addf %43, %44 : vector<8x32xf32>
    %46 = math.tanh %45 : vector<8x32xf32>
    %47 = arith.mulf %42, %46 : vector<8x32xf32>
    %48 = vector.extract_strided_slice %9 {offsets = [16, 0], sizes = [8, 128], strides = [1, 1]} : vector<64x128xf32> to vector<8x128xf32>
    %cst_14 = arith.constant dense<0.000000e+00> : vector<8x128xf32>
    %49 = tpu.matmul %47, %0, %cst_14 {dimension_numbers = #tpu.dot_dimension_numbers<[1], [0], [0], [1], [0, 0, 1, 1], [], []>} : vector<8x32xf32>, vector<32x128xf32>, vector<8x128xf32> -> vector<8x128xf32>
    %50 = arith.addf %48, %49 : vector<8x128xf32>
    %51 = vector.extract_strided_slice %50 {offsets = [0, 0], sizes = [8, 96], strides = [1, 1]} : vector<8x128xf32> to vector<8x96xf32>
    %52 = arith.negf %51 : vector<8x96xf32>
    %53 = math.exp %52 : vector<8x96xf32>
    %cst_15 = arith.constant 1.000000e+00 : f32
    %54 = vector.broadcast %cst_15 : f32 to vector<8x96xf32>
    %55 = arith.addf %54, %53 : vector<8x96xf32>
    %56 = arith.divf %54, %55 : vector<8x96xf32>
    %57 = vector.extract_strided_slice %50 {offsets = [0, 96], sizes = [8, 32], strides = [1, 1]} : vector<8x128xf32> to vector<8x32xf32>
    %58 = math.tanh %57 : vector<8x32xf32>
    %59 = vector.extract_strided_slice %56 {offsets = [0, 0], sizes = [8, 32], strides = [1, 1]} : vector<8x96xf32> to vector<8x32xf32>
    %60 = vector.extract_strided_slice %56 {offsets = [0, 32], sizes = [8, 32], strides = [1, 1]} : vector<8x96xf32> to vector<8x32xf32>
    %61 = vector.extract_strided_slice %56 {offsets = [0, 64], sizes = [8, 32], strides = [1, 1]} : vector<8x96xf32> to vector<8x32xf32>
    %62 = arith.mulf %60, %45 : vector<8x32xf32>
    %63 = arith.mulf %59, %58 : vector<8x32xf32>
    %64 = arith.addf %62, %63 : vector<8x32xf32>
    %65 = math.tanh %64 : vector<8x32xf32>
    %66 = arith.mulf %61, %65 : vector<8x32xf32>
    %67 = vector.extract_strided_slice %9 {offsets = [24, 0], sizes = [8, 128], strides = [1, 1]} : vector<64x128xf32> to vector<8x128xf32>
    %cst_16 = arith.constant dense<0.000000e+00> : vector<8x128xf32>
    %68 = tpu.matmul %66, %0, %cst_16 {dimension_numbers = #tpu.dot_dimension_numbers<[1], [0], [0], [1], [0, 0, 1, 1], [], []>} : vector<8x32xf32>, vector<32x128xf32>, vector<8x128xf32> -> vector<8x128xf32>
    %69 = arith.addf %67, %68 : vector<8x128xf32>
    %70 = vector.extract_strided_slice %69 {offsets = [0, 0], sizes = [8, 96], strides = [1, 1]} : vector<8x128xf32> to vector<8x96xf32>
    %71 = arith.negf %70 : vector<8x96xf32>
    %72 = math.exp %71 : vector<8x96xf32>
    %cst_17 = arith.constant 1.000000e+00 : f32
    %73 = vector.broadcast %cst_17 : f32 to vector<8x96xf32>
    %74 = arith.addf %73, %72 : vector<8x96xf32>
    %75 = arith.divf %73, %74 : vector<8x96xf32>
    %76 = vector.extract_strided_slice %69 {offsets = [0, 96], sizes = [8, 32], strides = [1, 1]} : vector<8x128xf32> to vector<8x32xf32>
    %77 = math.tanh %76 : vector<8x32xf32>
    %78 = vector.extract_strided_slice %75 {offsets = [0, 0], sizes = [8, 32], strides = [1, 1]} : vector<8x96xf32> to vector<8x32xf32>
    %79 = vector.extract_strided_slice %75 {offsets = [0, 32], sizes = [8, 32], strides = [1, 1]} : vector<8x96xf32> to vector<8x32xf32>
    %80 = vector.extract_strided_slice %75 {offsets = [0, 64], sizes = [8, 32], strides = [1, 1]} : vector<8x96xf32> to vector<8x32xf32>
    %81 = arith.mulf %79, %64 : vector<8x32xf32>
    %82 = arith.mulf %78, %77 : vector<8x32xf32>
    %83 = arith.addf %81, %82 : vector<8x32xf32>
    %84 = math.tanh %83 : vector<8x32xf32>
    %85 = arith.mulf %80, %84 : vector<8x32xf32>
    %86 = vector.extract_strided_slice %9 {offsets = [32, 0], sizes = [8, 128], strides = [1, 1]} : vector<64x128xf32> to vector<8x128xf32>
    %cst_18 = arith.constant dense<0.000000e+00> : vector<8x128xf32>
    %87 = tpu.matmul %85, %0, %cst_18 {dimension_numbers = #tpu.dot_dimension_numbers<[1], [0], [0], [1], [0, 0, 1, 1], [], []>} : vector<8x32xf32>, vector<32x128xf32>, vector<8x128xf32> -> vector<8x128xf32>
    %88 = arith.addf %86, %87 : vector<8x128xf32>
    %89 = vector.extract_strided_slice %88 {offsets = [0, 0], sizes = [8, 96], strides = [1, 1]} : vector<8x128xf32> to vector<8x96xf32>
    %90 = arith.negf %89 : vector<8x96xf32>
    %91 = math.exp %90 : vector<8x96xf32>
    %cst_19 = arith.constant 1.000000e+00 : f32
    %92 = vector.broadcast %cst_19 : f32 to vector<8x96xf32>
    %93 = arith.addf %92, %91 : vector<8x96xf32>
    %94 = arith.divf %92, %93 : vector<8x96xf32>
    %95 = vector.extract_strided_slice %88 {offsets = [0, 96], sizes = [8, 32], strides = [1, 1]} : vector<8x128xf32> to vector<8x32xf32>
    %96 = math.tanh %95 : vector<8x32xf32>
    %97 = vector.extract_strided_slice %94 {offsets = [0, 0], sizes = [8, 32], strides = [1, 1]} : vector<8x96xf32> to vector<8x32xf32>
    %98 = vector.extract_strided_slice %94 {offsets = [0, 32], sizes = [8, 32], strides = [1, 1]} : vector<8x96xf32> to vector<8x32xf32>
    %99 = vector.extract_strided_slice %94 {offsets = [0, 64], sizes = [8, 32], strides = [1, 1]} : vector<8x96xf32> to vector<8x32xf32>
    %100 = arith.mulf %98, %83 : vector<8x32xf32>
    %101 = arith.mulf %97, %96 : vector<8x32xf32>
    %102 = arith.addf %100, %101 : vector<8x32xf32>
    %103 = math.tanh %102 : vector<8x32xf32>
    %104 = arith.mulf %99, %103 : vector<8x32xf32>
    %105 = vector.extract_strided_slice %9 {offsets = [40, 0], sizes = [8, 128], strides = [1, 1]} : vector<64x128xf32> to vector<8x128xf32>
    %cst_20 = arith.constant dense<0.000000e+00> : vector<8x128xf32>
    %106 = tpu.matmul %104, %0, %cst_20 {dimension_numbers = #tpu.dot_dimension_numbers<[1], [0], [0], [1], [0, 0, 1, 1], [], []>} : vector<8x32xf32>, vector<32x128xf32>, vector<8x128xf32> -> vector<8x128xf32>
    %107 = arith.addf %105, %106 : vector<8x128xf32>
    %108 = vector.extract_strided_slice %107 {offsets = [0, 0], sizes = [8, 96], strides = [1, 1]} : vector<8x128xf32> to vector<8x96xf32>
    %109 = arith.negf %108 : vector<8x96xf32>
    %110 = math.exp %109 : vector<8x96xf32>
    %cst_21 = arith.constant 1.000000e+00 : f32
    %111 = vector.broadcast %cst_21 : f32 to vector<8x96xf32>
    %112 = arith.addf %111, %110 : vector<8x96xf32>
    %113 = arith.divf %111, %112 : vector<8x96xf32>
    %114 = vector.extract_strided_slice %107 {offsets = [0, 96], sizes = [8, 32], strides = [1, 1]} : vector<8x128xf32> to vector<8x32xf32>
    %115 = math.tanh %114 : vector<8x32xf32>
    %116 = vector.extract_strided_slice %113 {offsets = [0, 0], sizes = [8, 32], strides = [1, 1]} : vector<8x96xf32> to vector<8x32xf32>
    %117 = vector.extract_strided_slice %113 {offsets = [0, 32], sizes = [8, 32], strides = [1, 1]} : vector<8x96xf32> to vector<8x32xf32>
    %118 = vector.extract_strided_slice %113 {offsets = [0, 64], sizes = [8, 32], strides = [1, 1]} : vector<8x96xf32> to vector<8x32xf32>
    %119 = arith.mulf %117, %102 : vector<8x32xf32>
    %120 = arith.mulf %116, %115 : vector<8x32xf32>
    %121 = arith.addf %119, %120 : vector<8x32xf32>
    %122 = math.tanh %121 : vector<8x32xf32>
    %123 = arith.mulf %118, %122 : vector<8x32xf32>
    %124 = vector.extract_strided_slice %9 {offsets = [48, 0], sizes = [8, 128], strides = [1, 1]} : vector<64x128xf32> to vector<8x128xf32>
    %cst_22 = arith.constant dense<0.000000e+00> : vector<8x128xf32>
    %125 = tpu.matmul %123, %0, %cst_22 {dimension_numbers = #tpu.dot_dimension_numbers<[1], [0], [0], [1], [0, 0, 1, 1], [], []>} : vector<8x32xf32>, vector<32x128xf32>, vector<8x128xf32> -> vector<8x128xf32>
    %126 = arith.addf %124, %125 : vector<8x128xf32>
    %127 = vector.extract_strided_slice %126 {offsets = [0, 0], sizes = [8, 96], strides = [1, 1]} : vector<8x128xf32> to vector<8x96xf32>
    %128 = arith.negf %127 : vector<8x96xf32>
    %129 = math.exp %128 : vector<8x96xf32>
    %cst_23 = arith.constant 1.000000e+00 : f32
    %130 = vector.broadcast %cst_23 : f32 to vector<8x96xf32>
    %131 = arith.addf %130, %129 : vector<8x96xf32>
    %132 = arith.divf %130, %131 : vector<8x96xf32>
    %133 = vector.extract_strided_slice %126 {offsets = [0, 96], sizes = [8, 32], strides = [1, 1]} : vector<8x128xf32> to vector<8x32xf32>
    %134 = math.tanh %133 : vector<8x32xf32>
    %135 = vector.extract_strided_slice %132 {offsets = [0, 0], sizes = [8, 32], strides = [1, 1]} : vector<8x96xf32> to vector<8x32xf32>
    %136 = vector.extract_strided_slice %132 {offsets = [0, 32], sizes = [8, 32], strides = [1, 1]} : vector<8x96xf32> to vector<8x32xf32>
    %137 = vector.extract_strided_slice %132 {offsets = [0, 64], sizes = [8, 32], strides = [1, 1]} : vector<8x96xf32> to vector<8x32xf32>
    %138 = arith.mulf %136, %121 : vector<8x32xf32>
    %139 = arith.mulf %135, %134 : vector<8x32xf32>
    %140 = arith.addf %138, %139 : vector<8x32xf32>
    %141 = math.tanh %140 : vector<8x32xf32>
    %142 = arith.mulf %137, %141 : vector<8x32xf32>
    %143 = vector.extract_strided_slice %9 {offsets = [56, 0], sizes = [8, 128], strides = [1, 1]} : vector<64x128xf32> to vector<8x128xf32>
    %cst_24 = arith.constant dense<0.000000e+00> : vector<8x128xf32>
    %144 = tpu.matmul %142, %0, %cst_24 {dimension_numbers = #tpu.dot_dimension_numbers<[1], [0], [0], [1], [0, 0, 1, 1], [], []>} : vector<8x32xf32>, vector<32x128xf32>, vector<8x128xf32> -> vector<8x128xf32>
    %145 = arith.addf %143, %144 : vector<8x128xf32>
    %146 = vector.extract_strided_slice %145 {offsets = [0, 0], sizes = [8, 96], strides = [1, 1]} : vector<8x128xf32> to vector<8x96xf32>
    %147 = arith.negf %146 : vector<8x96xf32>
    %148 = math.exp %147 : vector<8x96xf32>
    %cst_25 = arith.constant 1.000000e+00 : f32
    %149 = vector.broadcast %cst_25 : f32 to vector<8x96xf32>
    %150 = arith.addf %149, %148 : vector<8x96xf32>
    %151 = arith.divf %149, %150 : vector<8x96xf32>
    %152 = vector.extract_strided_slice %145 {offsets = [0, 96], sizes = [8, 32], strides = [1, 1]} : vector<8x128xf32> to vector<8x32xf32>
    %153 = math.tanh %152 : vector<8x32xf32>
    %154 = vector.extract_strided_slice %151 {offsets = [0, 0], sizes = [8, 32], strides = [1, 1]} : vector<8x96xf32> to vector<8x32xf32>
    %155 = vector.extract_strided_slice %151 {offsets = [0, 32], sizes = [8, 32], strides = [1, 1]} : vector<8x96xf32> to vector<8x32xf32>
    %156 = vector.extract_strided_slice %151 {offsets = [0, 64], sizes = [8, 32], strides = [1, 1]} : vector<8x96xf32> to vector<8x32xf32>
    %157 = arith.mulf %155, %140 : vector<8x32xf32>
    %158 = arith.mulf %154, %153 : vector<8x32xf32>
    %159 = arith.addf %157, %158 : vector<8x32xf32>
    %160 = math.tanh %159 : vector<8x32xf32>
    %161 = arith.mulf %156, %160 : vector<8x32xf32>
    %c0_26 = arith.constant 0 : index
    %c0_27 = arith.constant 0 : index
    %162 = vector.load %arg5[%c0_26, %c0_27] : memref<32x16xf32, #tpu.memory_space<vmem>>, vector<32x16xf32>
    %cst_28 = arith.constant dense<0.000000e+00> : vector<8x16xf32>
    %163 = tpu.matmul %161, %162, %cst_28 {dimension_numbers = #tpu.dot_dimension_numbers<[1], [0], [0], [1], [0, 0, 1, 1], [], []>} : vector<8x32xf32>, vector<32x16xf32>, vector<8x16xf32> -> vector<8x16xf32>
    %c0_29 = arith.constant 0 : index
    %c0_30 = arith.constant 0 : index
    %164 = vector.load %arg6[%c0_29, %c0_30] : memref<1x16xf32, #tpu.memory_space<vmem>>, vector<1x16xf32>
    %165 = vector.broadcast %164 : vector<1x16xf32> to vector<8x16xf32>
    %166 = arith.addf %163, %165 : vector<8x16xf32>
    %cst_31 = arith.constant 0.000000e+00 : f32
    %167 = vector.broadcast %cst_31 : f32 to vector<8x16xf32>
    %168 = arith.maximumf %166, %167 : vector<8x16xf32>
    %c0_32 = arith.constant 0 : index
    %c0_33 = arith.constant 0 : index
    %169 = vector.load %arg7[%c0_32, %c0_33] : memref<1x16xf32, #tpu.memory_space<vmem>>, vector<1x16xf32>
    %cst_34 = arith.constant dense<0.000000e+00> : vector<1x8xf32>
    %170 = tpu.matmul %169, %168, %cst_34 {dimension_numbers = #tpu.dot_dimension_numbers<[1], [1], [0], [0], [0, 0, 1, 0], [], []>} : vector<1x16xf32>, vector<8x16xf32>, vector<1x8xf32> -> vector<1x8xf32>
    %c0_35 = arith.constant 0 : index
    %c0_36 = arith.constant 0 : index
    %171 = memref.load %arg8[%c0_35, %c0_36] : memref<1x1xf32, #tpu.memory_space<smem>>
    %172 = vector.broadcast %171 : f32 to vector<1x8xf32>
    %173 = arith.addf %170, %172 : vector<1x8xf32>
    %c0_37 = arith.constant 0 : index
    %c0_38 = arith.constant 0 : index
    %c0_39 = arith.constant 0 : index
    %174 = vector.load %arg9[%c0_37, %c0_38, %c0_39] : memref<1x1x8xf32, #tpu.memory_space<vmem>>, vector<1x1x8xf32>
    %175 = vector.shape_cast %174 : vector<1x1x8xf32> to vector<1x8xf32>
    %176 = vector.shape_cast %173 : vector<1x8xf32> to vector<1x1x8xf32>
    tpu.vector_store %arg9[%c0_37, %c0_38, %c0_39], %176 {strides = array<i32>} : memref<1x1x8xf32, #tpu.memory_space<vmem>>, vector<1x1x8xf32>,
    return
  }
  func.func @transform_0(%arg0: i32) -> (i32, i32, i32) {
    %c0_i32 = arith.constant 0 : i32
    %c0_i32_0 = arith.constant 0 : i32
    %c0_i32_1 = arith.constant 0 : i32
    return %arg0, %c0_i32, %c0_i32_0 : i32, i32, i32
  }
  func.func @transform_1(%arg0: i32) -> (i32, i32) {
    %c0_i32 = arith.constant 0 : i32
    %c0_i32_0 = arith.constant 0 : i32
    %c0_i32_1 = arith.constant 0 : i32
    return %c0_i32, %c0_i32_0 : i32, i32
  }
  func.func @transform_2(%arg0: i32) -> (i32, i32) {
    %c0_i32 = arith.constant 0 : i32
    %c0_i32_0 = arith.constant 0 : i32
    %c0_i32_1 = arith.constant 0 : i32
    return %c0_i32, %c0_i32_0 : i32, i32
  }
  func.func @transform_3(%arg0: i32) -> (i32, i32) {
    %c0_i32 = arith.constant 0 : i32
    %c0_i32_0 = arith.constant 0 : i32
    %c0_i32_1 = arith.constant 0 : i32
    return %c0_i32, %c0_i32_0 : i32, i32
  }
  func.func @transform_4(%arg0: i32) -> (i32, i32) {
    %c0_i32 = arith.constant 0 : i32
    %c0_i32_0 = arith.constant 0 : i32
    %c0_i32_1 = arith.constant 0 : i32
    return %c0_i32, %c0_i32_0 : i32, i32
  }
  func.func @transform_5(%arg0: i32) -> (i32, i32) {
    %c0_i32 = arith.constant 0 : i32
    %c0_i32_0 = arith.constant 0 : i32
    %c0_i32_1 = arith.constant 0 : i32
    return %c0_i32, %c0_i32_0 : i32, i32
  }
  func.func @transform_6(%arg0: i32) -> (i32, i32) {
    %c0_i32 = arith.constant 0 : i32
    %c0_i32_0 = arith.constant 0 : i32
    %c0_i32_1 = arith.constant 0 : i32
    return %c0_i32, %c0_i32_0 : i32, i32
  }
  func.func @transform_7(%arg0: i32) -> (i32, i32) {
    %c0_i32 = arith.constant 0 : i32
    %c0_i32_0 = arith.constant 0 : i32
    %c0_i32_1 = arith.constant 0 : i32
    return %c0_i32, %c0_i32_0 : i32, i32
  }
  func.func @transform_8(%arg0: i32) -> (i32, i32, i32) {
    %c0_i32 = arith.constant 0 : i32
    %c0_i32_0 = arith.constant 0 : i32
    %c0_i32_1 = arith.constant 0 : i32
    return %arg0, %c0_i32, %c0_i32_0 : i32, i32, i32
  }
}

</mosaic_0001>

<bundles_post_ra>
// kernel: tpu_custom_call.1
= control target key start
LH: loop header
LB: loop body
LE: loop exit
PB: predicated region body
PF: predicated region fallthrough
CT: control target
= control target key end

     0   :  { %vm51_vm0 = vcmask 64512   ;;  %v1456_v3 = vmov 0.0   ;;  %s1740_s0 = inlined_call_operand.vmem [shape: f32[1,64,8], index: 0, kind: input, shape index: {}]   ;;  %s1741_s1 = inlined_call_operand.vmem [shape: f32[8,128], index: 1, kind: input, shape index: {}]   ;;  %s1742_s2 = inlined_call_operand.vmem [shape: f32[32,128], index: 2, kind: input, shape index: {}]   ;;  %s1743_s3 = inlined_call_operand.vmem [shape: f32[1,128], index: 3, kind: input, shape index: {}]   ;;  %s1744_s4 = inlined_call_operand.vmem [shape: f32[32,16], index: 4, kind: input, shape index: {}]   ;;  %s1745_s5 = inlined_call_operand.vmem [shape: f32[1,16], index: 5, kind: input, shape index: {}]   ;;  %s1746_s6 = inlined_call_operand.vmem [shape: f32[1,16], index: 6, kind: input, shape index: {}]   ;;  %s1747_s7 = inlined_call_operand.<no memory space> [shape: f32[1,1], index: 7, kind: input, shape index: {}]   ;;  %s1748_s8 = inlined_call_operand.hbm [shape: f32[1,1,8], index: 8, kind: output, shape index: {}]  }
   0x1   :  { %v43_v0 = vld [vmem:[%s1741_s1] sm:$0xff]  ;;  %v1515_v2 = vld [vmem:[%s1742_s2 + $0x18] sm:$0xff]  ;;  %1261 = vmatprep.subr.mxu1 %v1456_v3  ;;  %v36_v4 = vld [vmem:[%s1740_s0 + $0x8] sm:$0xff] }
   0x2   :  { %v35_v1 = vld [vmem:[%s1740_s0] sm:$0xff]  ;;  %1247 = vmatprep.subr.mxu0 %v43_v0  ;;  %v1525_v5 = vld [vmem:[%s1742_s2 + $0x10] sm:$0xff] }
   0x3   :  { %1248 = vmatpush3.msra.mxu0 %v43_v0  ;;  %1249 = vmatprep.mubr.msk.f32.mxu0 %vm51_vm0, %v35_v1 }
   0x4   :  { %14 = vsyncpa [#allocation4], 0  ;;  %1262 = vmatpush3.msra.mxu1 %v1515_v2  ;;  %1250 = vmatmul.mubr.msk.f32.vlgmr.msra.gmra.mxu0 %vm51_vm0, %v36_v4  ;;  %v1533_v6 = vld [vmem:[%s1742_s2 + $0x8] sm:$0xff]  ;;  %vm1457_vm1 = vmmov 0   ;;  %v1543_v7 = vld [vmem:[%s1742_s2] sm:$0xff]  ;;  %s1458_s19 = smov 32  }
   0x5   :  { %1263 = vmatprep.subr.mxu1 %v1456_v3  ;;  %1269 = vmatprep.mubr.msk.f32.mxu1 %vm1457_vm1, %v1456_v3  ;;  %v1571_v9 = vld [vmem:[%s1743_s3] ss:$0 sm:$0xff]  ;;  %s1459_s3 = smov 64   ;;  %vm181_vm2 = vcmask 261120   ;;  %v37_v43 = vld [vmem:[%s1740_s0 + $0x10] sm:$0xff]  ;;  %v38_v44 = vld [vmem:[%s1740_s0 + $0x18] sm:$0xff] }
   0x6   :  { %1264 = vmatpush3.msra.mxu1 %v1525_v5  ;;  %1283 = vmatprep.subr.mxu0 %v1456_v3  ;;  %v39_v45 = vld [vmem:[%s1740_s0 + $0x20] sm:$0xff]  ;;  %v40_v46 = vld [vmem:[%s1740_s0 + $0x28] sm:$0xff]  ;;  %v41_v47 = vld [vmem:[%s1740_s0 + $0x30] sm:$0xff]  ;;  %vm1070_vm3 = vcmask 130048   ;;  %vm1147_vm4 = vcmask 57344  }
   0x7   :  { %1265 = vmatprep.subr.mxu1 %v1456_v3  ;;  %1284 = vmatpush3.msra.mxu0 %v1515_v2  ;;  %v42_v48 = vld [vmem:[%s1740_s0 + $0x38] sm:$0xff] }
   0x8   :  { %1266 = vmatpush3.msra.mxu1 %v1533_v6  ;;  %1285 = vmatprep.subr.mxu0 %v1456_v3 }
   0x9   :  { %1267 = vmatprep.subr.mxu1 %v1456_v3  ;;  %1286 = vmatpush3.msra.mxu0 %v1525_v5 }
   0xa   :  { %1268 = vmatpush3.msra.mxu1 %v1543_v7  ;;  %1287 = vmatprep.subr.mxu0 %v1456_v3 }
   0xb   :  { %1270 = vmatmul.mubr.f32.vlgmr.msra.gmra.mxu1 %v1456_v3  ;;  %1272 = vmatprep.subr.mxu1 %v1456_v3 }
   0xc   :  { %1273 = vmatpush3.msra.mxu1 %v1515_v2  ;;  %1280 = vmatprep.mubr.msk.f32.mxu1 %vm1457_vm1, %v1456_v3 }
   0xd   :  { %1274 = vmatprep.subr.mxu1 %v1456_v3  ;;  %1288 = vmatpush3.msra.mxu0 %v1533_v6 }
   0xe   :  { %1275 = vmatpush3.msra.mxu1 %v1525_v5  ;;  %1289 = vmatprep.subr.mxu0 %v1456_v3 }
   0xf   :  { %1276 = vmatprep.subr.mxu1 %v1456_v3  ;;  %1290 = vmatpush3.msra.mxu0 %v1543_v7 }
  0x10   :  { %1277 = vmatpush3.msra.mxu1 %v1533_v6  ;;  %1305 = vmatprep.subr.mxu0 %v1456_v3 }
  0x11   :  { %1278 = vmatprep.subr.mxu1 %v1456_v3  ;;  %1252 = vmatprep.mubr.msk.f32.mxu0 %vm51_vm0, %v37_v43 }
  0x12   :  { %1279 = vmatpush3.msra.mxu1 %v1543_v7  ;;  %1253 = vmatmul.mubr.msk.f32.gmra.mxu0 %vm51_vm0, %v38_v44 }
  0x13   :  { %1294 = vmatprep.subr.mxu1 %v1456_v3  ;;  %1255 = vmatprep.mubr.msk.f32.mxu0 %vm51_vm0, %v39_v45 }
  0x16   :  { %1256 = vmatmul.mubr.msk.f32.gmra.mxu0 %vm51_vm0, %v40_v46 }
  0x17   :  { %1258 = vmatprep.mubr.msk.f32.mxu0 %vm51_vm0, %v41_v47 }
  0x1a   :  { %1259 = vmatmul.mubr.msk.f32.gmra.mxu0 %vm51_vm0, %v42_v48 }
  0x1b   :  { %1291 = vmatprep.mubr.msk.f32.mxu0 %vm1457_vm1, %v1456_v3 }
  0xc4   :  { %v1251_v8 = vpop.f32.mrf.mxu0 }
  0xc5   :  { %v148_v29 = vadd.f32 %v1251_v8, %v1571_v9 }
  0xc6   :  { %v142_v10 = vpop.f32.mrf.mxu0 }
  0xc7   :  { %v143_v11 = vadd.f32 %v1571_v9, %v142_v10 }
  0xcb   :  { %v251_v12 = vpop.f32.mrf.mxu1 }
  0xcc   :  { %v255_v13 = vadd.f32 %v251_v12, %v143_v11 }
  0xcd   :  { %v1271_v14 = vpop.f32.mrf.mxu1 }
  0xce   :  { %1370 = vtanh.f32 %v255_v13  ;;  %v1172_v16 = vmul.f32 -1.442695, %v255_v13 }
  0xd0   :  { %1372 = vpow2.f32 %v1172_v16 }
  0xd2   :  { %v1254_v53 = vpop.f32.mrf.mxu0 }
  0xd4   :  { %v152_v54 = vpop.f32.mrf.mxu0 }
  0xd5   :  { %v153_v59 = vadd.f32 %v1571_v9, %v152_v54 }
  0xd6   :  { %v1631_v55 = vpop.f32.mrf.mxu0 }
  0xd8   :  { %v1633_v56 = vpop.f32.mrf.mxu0 }
  0xda   :  { %v1635_v57 = vpop.f32.mrf.mxu0 }
  0xdb   :  { %v1371_v15 = vpop.eup %1370 }
  0xdc   :  { %265 = vrot.lane.b32.xlu0 %v1371_v15, %s1458_s19  ;;  %v1637_v58 = vpop.f32.mrf.mxu0 }
  0xdd   :  { %v1373_v17 = vpop.eup %1372 }
  0xde   :  { %v259_v18 = vadd.f32 1.0, %v1373_v17 }
  0xe0   :  { %1374 = vrcp.f32 %v259_v18 }
  0xed   :  { %v1375_v19 = vpop.eup %1374 }
  0xee   :  { %v263_v22 = vmul.f32 0.0, %v1375_v19 }
 0x14e   :  { %v266_v20 = vpop.permute.xlu0 %265 }
 0x14f   :  { %v268_v21 = vmul.f32 %v1375_v19, %v266_v20 }
 0x151   :  { %270 = vrot.lane.b32.xlu0 %v268_v21, %s1458_s19 }
 0x1c3   :  { %v271_v23 = vpop.permute.xlu0 %270 }
 0x1c4   :  { %v273_v24 = vadd.f32 %v271_v23, %v263_v22 }
 0x1c6   :  { %1376 = vtanh.f32 %v273_v24 }
 0x1d3   :  { %v1377_v25 = vpop.eup %1376 }
 0x1d4   :  { %276 = vrot.lane.b32.xlu1 %v1377_v25, %s1458_s19 }
 0x246   :  { %v277_v26 = vpop.permute.xlu1 %276 }
 0x247   :  { %v279_v27 = vmul.f32 %v1375_v19, %v277_v26  ;;  %v158_v19 = vadd.f32 %v1254_v53, %v1571_v9 }
 0x249   :  { %281 = vrot.lane.b32.xlu1 %v279_v27, %s1459_s3 }
 0x2bb   :  { %v282_v28 = vpop.permute.xlu1 %281 }
 0x2bc   :  { %1281 = vmatmul.mubr.msk.f32.vlgmr.msra.gmra.mxu1 %vm181_vm2, %v282_v28 }
 0x2bd   :  { %1295 = vmatpush3.msra.mxu1 %v1515_v2  ;;  %1302 = vmatprep.mubr.msk.f32.mxu1 %vm1457_vm1, %v1456_v3 }
 0x2be   :  { %1296 = vmatprep.subr.mxu1 %v1456_v3 }
 0x2bf   :  { %1297 = vmatpush3.msra.mxu1 %v1525_v5 }
 0x2c0   :  { %1298 = vmatprep.subr.mxu1 %v1456_v3 }
 0x2c1   :  { %1299 = vmatpush3.msra.mxu1 %v1533_v6 }
 0x2c2   :  { %1300 = vmatprep.subr.mxu1 %v1456_v3 }
 0x2c3   :  { %1301 = vmatpush3.msra.mxu1 %v1543_v7 }
 0x2c4   :  { %1316 = vmatprep.subr.mxu1 %v1456_v3 }
 0x37c   :  { %v351_v30 = vpop.f32.mrf.mxu1 }
 0x37d   :  { %v355_v31 = vadd.f32 %v351_v30, %v148_v29 }
 0x37e   :  { %v1282_v32 = vpop.f32.mrf.mxu1 }
 0x37f   :  { %1378 = vtanh.f32 %v355_v31  ;;  %v1174_v34 = vmul.f32 -1.442695, %v355_v31 }
 0x381   :  { %1380 = vpow2.f32 %v1174_v34 }
 0x38c   :  { %v1379_v33 = vpop.eup %1378 }
 0x38d   :  { %365 = vrot.lane.b32.xlu0 %v1379_v33, %s1458_s19 }
 0x38e   :  { %v1381_v35 = vpop.eup %1380 }
 0x38f   :  { %v359_v36 = vadd.f32 1.0, %v1381_v35 }
 0x391   :  { %1382 = vrcp.f32 %v359_v36 }
 0x39e   :  { %v1383_v37 = vpop.eup %1382 }
 0x39f   :  { %v363_v40 = vmul.f32 %v1383_v37, %v273_v24 }
 0x3ff   :  { %v366_v38 = vpop.permute.xlu0 %365 }
 0x400   :  { %v368_v39 = vmul.f32 %v1383_v37, %v366_v38 }
 0x402   :  { %370 = vrot.lane.b32.xlu1 %v368_v39, %s1458_s19 }
 0x474   :  { %v371_v41 = vpop.permute.xlu1 %370 }
 0x475   :  { %v373_v42 = vadd.f32 %v371_v41, %v363_v40 }
 0x477   :  { %1384 = vtanh.f32 %v373_v42 }
 0x484   :  { %v1385_v49 = vpop.eup %1384 }
 0x485   :  { %376 = vrot.lane.b32.xlu0 %v1385_v49, %s1458_s19 }
 0x4f7   :  { %v377_v50 = vpop.permute.xlu0 %376 }
 0x4f8   :  { %v379_v51 = vmul.f32 %v1383_v37, %v377_v50  ;;  %v163_v37 = vadd.f32 %v1571_v9, %v1633_v56 }
 0x4fa   :  { %381 = vrot.lane.b32.xlu1 %v379_v51, %s1459_s3 }
 0x56c   :  { %v382_v52 = vpop.permute.xlu1 %381 }
 0x56d   :  { %1292 = vmatmul.mubr.msk.f32.vlgmr.msra.gmra.mxu0 %vm181_vm2, %v382_v52 }
 0x56e   :  { %1306 = vmatpush3.msra.mxu0 %v1515_v2  ;;  %1313 = vmatprep.mubr.msk.f32.mxu0 %vm1457_vm1, %v1456_v3 }
 0x56f   :  { %1307 = vmatprep.subr.mxu0 %v1456_v3 }
 0x570   :  { %1308 = vmatpush3.msra.mxu0 %v1525_v5 }
 0x571   :  { %1309 = vmatprep.subr.mxu0 %v1456_v3 }
 0x572   :  { %1310 = vmatpush3.msra.mxu0 %v1533_v6 }
 0x573   :  { %1311 = vmatprep.subr.mxu0 %v1456_v3 }
 0x574   :  { %1312 = vmatpush3.msra.mxu0 %v1543_v7 }
 0x575   :  { %1327 = vmatprep.subr.mxu0 %v1456_v3 }
 0x62d   :  { %v451_v60 = vpop.f32.mrf.mxu0 }
 0x62e   :  { %v455_v61 = vadd.f32 %v451_v60, %v153_v59 }
 0x62f   :  { %v1293_v62 = vpop.f32.mrf.mxu0 }
 0x630   :  { %1386 = vtanh.f32 %v455_v61  ;;  %v1176_v0 = vmul.f32 -1.442695, %v455_v61 }
 0x632   :  { %1388 = vpow2.f32 %v1176_v0 }
 0x63d   :  { %v1387_v63 = vpop.eup %1386 }
 0x63e   :  { %465 = vrot.lane.b32.xlu0 %v1387_v63, %s1458_s19 }
 0x63f   :  { %v1389_v1 = vpop.eup %1388 }
 0x640   :  { %v459_v4 = vadd.f32 1.0, %v1389_v1 }
 0x642   :  { %1390 = vrcp.f32 %v459_v4 }
 0x64f   :  { %v1391_v8 = vpop.eup %1390 }
 0x650   :  { %v463_v12 = vmul.f32 %v1391_v8, %v373_v42 }
 0x6b0   :  { %v466_v10 = vpop.permute.xlu0 %465 }
 0x6b1   :  { %v468_v11 = vmul.f32 %v1391_v8, %v466_v10 }
 0x6b3   :  { %470 = vrot.lane.b32.xlu1 %v468_v11, %s1458_s19 }
 0x725   :  { %v471_v13 = vpop.permute.xlu1 %470 }
 0x726   :  { %v473_v14 = vadd.f32 %v471_v13, %v463_v12  ;;  %v173_v13 = vadd.f32 %v1571_v9, %v1637_v58 }
 0x728   :  { %1392 = vtanh.f32 %v473_v14 }
 0x735   :  { %v1393_v15 = vpop.eup %1392 }
 0x736   :  { %476 = vrot.lane.b32.xlu0 %v1393_v15, %s1458_s19 }
 0x7a8   :  { %v477_v16 = vpop.permute.xlu0 %476 }
 0x7a9   :  { %v479_v17 = vmul.f32 %v1391_v8, %v477_v16 }
 0x7ab   :  { %481 = vrot.lane.b32.xlu1 %v479_v17, %s1459_s3 }
 0x81d   :  { %v482_v18 = vpop.permute.xlu1 %481 }
 0x81e   :  { %1303 = vmatmul.mubr.msk.f32.vlgmr.msra.gmra.mxu1 %vm181_vm2, %v482_v18 }
 0x81f   :  { %1317 = vmatpush3.msra.mxu1 %v1515_v2  ;;  %1324 = vmatprep.mubr.msk.f32.mxu1 %vm1457_vm1, %v1456_v3 }
 0x820   :  { %1318 = vmatprep.subr.mxu1 %v1456_v3 }
 0x821   :  { %1319 = vmatpush3.msra.mxu1 %v1525_v5 }
 0x822   :  { %1320 = vmatprep.subr.mxu1 %v1456_v3 }
 0x823   :  { %1321 = vmatpush3.msra.mxu1 %v1533_v6 }
 0x824   :  { %1322 = vmatprep.subr.mxu1 %v1456_v3 }
 0x825   :  { %1323 = vmatpush3.msra.mxu1 %v1543_v7 }
 0x826   :  { %1338 = vmatprep.subr.mxu1 %v1456_v3 }
 0x8de   :  { %v551_v20 = vpop.f32.mrf.mxu1 }
 0x8df   :  { %v555_v21 = vadd.f32 %v551_v20, %v158_v19 }
 0x8e0   :  { %v1304_v22 = vpop.f32.mrf.mxu1 }
 0x8e1   :  { %1394 = vtanh.f32 %v555_v21  ;;  %v1178_v24 = vmul.f32 -1.442695, %v555_v21 }
 0x8e3   :  { %1396 = vpow2.f32 %v1178_v24 }
 0x8ee   :  { %v1395_v23 = vpop.eup %1394 }
 0x8ef   :  { %565 = vrot.lane.b32.xlu0 %v1395_v23, %s1458_s19 }
 0x8f0   :  { %v1397_v25 = vpop.eup %1396 }
 0x8f1   :  { %v559_v26 = vadd.f32 1.0, %v1397_v25 }
 0x8f3   :  { %1398 = vrcp.f32 %v559_v26 }
 0x900   :  { %v1399_v27 = vpop.eup %1398 }
 0x901   :  { %v563_v30 = vmul.f32 %v1399_v27, %v473_v14 }
 0x961   :  { %v566_v28 = vpop.permute.xlu0 %565 }
 0x962   :  { %v568_v29 = vmul.f32 %v1399_v27, %v566_v28 }
 0x964   :  { %570 = vrot.lane.b32.xlu1 %v568_v29, %s1458_s19 }
 0x9d6   :  { %v571_v31 = vpop.permute.xlu1 %570 }
 0x9d7   :  { %v573_v32 = vadd.f32 %v571_v31, %v563_v30  ;;  %v178_v30 = vadd.f32 %v1635_v57, %v1571_v9  ;;  %v983_v57 = vld [vmem:[%s1744_s4 + $0x18] sm:$0xff] }
 0x9d9   :  { %1400 = vtanh.f32 %v573_v32 }
 0x9e6   :  { %v1401_v33 = vpop.eup %1400 }
 0x9e7   :  { %576 = vrot.lane.b32.xlu0 %v1401_v33, %s1458_s19 }
 0xa59   :  { %v577_v34 = vpop.permute.xlu0 %576 }
 0xa5a   :  { %v579_v35 = vmul.f32 %v1399_v27, %v577_v34 }
 0xa5c   :  { %581 = vrot.lane.b32.xlu1 %v579_v35, %s1459_s3 }
 0xace   :  { %v582_v36 = vpop.permute.xlu1 %581 }
 0xacf   :  { %1314 = vmatmul.mubr.msk.f32.vlgmr.msra.gmra.mxu0 %vm181_vm2, %v582_v36 }
 0xad0   :  { %1328 = vmatpush3.msra.mxu0 %v1515_v2  ;;  %1335 = vmatprep.mubr.msk.f32.mxu0 %vm1457_vm1, %v1456_v3 }
 0xad1   :  { %1329 = vmatprep.subr.mxu0 %v1456_v3 }
 0xad2   :  { %1330 = vmatpush3.msra.mxu0 %v1525_v5 }
 0xad3   :  { %1331 = vmatprep.subr.mxu0 %v1456_v3 }
 0xad4   :  { %1332 = vmatpush3.msra.mxu0 %v1533_v6 }
 0xad5   :  { %1333 = vmatprep.subr.mxu0 %v1456_v3 }
 0xad6   :  { %1334 = vmatpush3.msra.mxu0 %v1543_v7 }
 0xad7   :  { %1349 = vmatprep.subr.mxu0 %v1456_v3 }
 0xb8f   :  { %v651_v38 = vpop.f32.mrf.mxu0 }
 0xb90   :  { %v655_v39 = vadd.f32 %v651_v38, %v163_v37 }
 0xb91   :  { %v1315_v40 = vpop.f32.mrf.mxu0 }
 0xb92   :  { %1402 = vtanh.f32 %v655_v39  ;;  %v1180_v42 = vmul.f32 -1.442695, %v655_v39 }
 0xb94   :  { %1404 = vpow2.f32 %v1180_v42 }
 0xb9f   :  { %v1403_v41 = vpop.eup %1402 }
 0xba0   :  { %665 = vrot.lane.b32.xlu0 %v1403_v41, %s1458_s19 }
 0xba1   :  { %v1405_v43 = vpop.eup %1404 }
 0xba2   :  { %v659_v44 = vadd.f32 1.0, %v1405_v43  ;;  %v982_v43 = vld [vmem:[%s1744_s4 + $0x10] sm:$0xff] }
 0xba4   :  { %1406 = vrcp.f32 %v659_v44  ;;  %v981_v44 = vld [vmem:[%s1744_s4 + $0x8] sm:$0xff] }
 0xbb1   :  { %v1407_v45 = vpop.eup %1406 }
 0xbb2   :  { %v663_v48 = vmul.f32 %v1407_v45, %v573_v32 }
 0xc12   :  { %v666_v46 = vpop.permute.xlu0 %665 }
 0xc13   :  { %v668_v47 = vmul.f32 %v1407_v45, %v666_v46 }
 0xc15   :  { %670 = vrot.lane.b32.xlu1 %v668_v47, %s1458_s19 }
 0xc87   :  { %v671_v49 = vpop.permute.xlu1 %670 }
 0xc88   :  { %v673_v50 = vadd.f32 %v671_v49, %v663_v48 }
 0xc8a   :  { %1408 = vtanh.f32 %v673_v50 }
 0xc97   :  { %v1409_v51 = vpop.eup %1408 }
 0xc98   :  { %676 = vrot.lane.b32.xlu0 %v1409_v51, %s1458_s19 }
 0xd0a   :  { %v677_v52 = vpop.permute.xlu0 %676 }
 0xd0b   :  { %v679_v53 = vmul.f32 %v1407_v45, %v677_v52  ;;  %v980_v45 = vld [vmem:[%s1744_s4] sm:$0xff] }
 0xd0d   :  { %681 = vrot.lane.b32.xlu1 %v679_v53, %s1459_s3 }
 0xd7f   :  { %v682_v54 = vpop.permute.xlu1 %681 }
 0xd80   :  { %1325 = vmatmul.mubr.msk.f32.vlgmr.msra.gmra.mxu1 %vm181_vm2, %v682_v54  ;;  %v1067_v54 = vld [vmem:[%s1746_s6] sm:$0x1] }
 0xd81   :  { %1339 = vmatpush3.msra.mxu1 %v1515_v2  ;;  %1346 = vmatprep.mubr.msk.f32.mxu1 %vm1457_vm1, %v1456_v3  ;;  %v168_v2 = vadd.f32 %v1631_v55, %v1571_v9 }
 0xd82   :  { %1340 = vmatprep.subr.mxu1 %v1456_v3 }
 0xd83   :  { %1341 = vmatpush3.msra.mxu1 %v1525_v5 }
 0xd84   :  { %1342 = vmatprep.subr.mxu1 %v1456_v3 }
 0xd85   :  { %1343 = vmatpush3.msra.mxu1 %v1533_v6 }
 0xd86   :  { %1344 = vmatprep.subr.mxu1 %v1456_v3 }
 0xd87   :  { %1345 = vmatpush3.msra.mxu1 %v1543_v7 }
 0xd88   :  { %1360 = vmatprep.subr.mxu1 %v1456_v3 }
 0xe40   :  { %v751_v56 = vpop.f32.mrf.mxu1 }
 0xe41   :  { %v755_v59 = vadd.f32 %v751_v56, %v168_v2  ;;  %v1069_v2 = vstv %s1747_s7 }
 0xe42   :  { %v1326_v60 = vpop.f32.mrf.mxu1 }
 0xe43   :  { %1410 = vtanh.f32 %v755_v59  ;;  %v1182_v5 = vmul.f32 -1.442695, %v755_v59 }
 0xe45   :  { %1412 = vpow2.f32 %v1182_v5 }
 0xe50   :  { %v1411_v61 = vpop.eup %1410 }
 0xe51   :  { %765 = vrot.lane.b32.xlu0 %v1411_v61, %s1458_s19 }
 0xe52   :  { %v1413_v62 = vpop.eup %1412 }
 0xe53   :  { %v759_v6 = vadd.f32 1.0, %v1413_v62 }
 0xe55   :  { %1414 = vrcp.f32 %v759_v6 }
 0xe62   :  { %v1415_v63 = vpop.eup %1414 }
 0xe63   :  { %v763_v1 = vmul.f32 %v1415_v63, %v673_v50  ;;  %v1187_v50 = vld [vmem:[%s1745_s5] ss:$0 sm:$0xff] }
 0xec3   :  { %v766_v0 = vpop.permute.xlu0 %765 }
 0xec4   :  { %v768_v7 = vmul.f32 %v1415_v63, %v766_v0 }
 0xec6   :  { %770 = vrot.lane.b32.xlu1 %v768_v7, %s1458_s19 }
 0xf38   :  { %v771_v4 = vpop.permute.xlu1 %770 }
 0xf39   :  { %v773_v55 = vadd.f32 %v771_v4, %v763_v1 }
 0xf3b   :  { %1416 = vtanh.f32 %v773_v55 }
 0xf48   :  { %v1417_v8 = vpop.eup %1416 }
 0xf49   :  { %776 = vrot.lane.b32.xlu0 %v1417_v8, %s1458_s19 }
 0xfbb   :  { %v777_v10 = vpop.permute.xlu0 %776 }
 0xfbc   :  { %v779_v11 = vmul.f32 %v1415_v63, %v777_v10 }
 0xfbe   :  { %781 = vrot.lane.b32.xlu1 %v779_v11, %s1459_s3 }
0x1030   :  { %v782_v12 = vpop.permute.xlu1 %781 }
0x1031   :  { %1336 = vmatmul.mubr.msk.f32.vlgmr.msra.gmra.mxu0 %vm181_vm2, %v782_v12 }
0x1032   :  { %1357 = vmatprep.mubr.msk.f32.mxu0 %vm1457_vm1, %v1456_v3  ;;  %1350 = vmatpush3.msra.mxu0 %v983_v57 }
0x1033   :  { %1351 = vmatprep.subr.mxu0 %v1456_v3 }
0x1034   :  { %1352 = vmatpush3.msra.mxu0 %v982_v43 }
0x1035   :  { %1353 = vmatprep.subr.mxu0 %v1456_v3 }
0x1036   :  { %1354 = vmatpush3.msra.mxu0 %v981_v44 }
0x1037   :  { %1355 = vmatprep.subr.mxu0 %v1456_v3 }
0x1038   :  { %1356 = vmatpush3.msra.mxu0 %v980_v45 }
0x10f1   :  { %v851_v14 = vpop.f32.mrf.mxu0 }
0x10f2   :  { %v855_v15 = vadd.f32 %v851_v14, %v173_v13 }
0x10f3   :  { %v1337_v16 = vpop.f32.mrf.mxu0 }
0x10f4   :  { %1418 = vtanh.f32 %v855_v15  ;;  %v1184_v18 = vmul.f32 -1.442695, %v855_v15 }
0x10f6   :  { %1420 = vpow2.f32 %v1184_v18 }
0x1101   :  { %v1419_v17 = vpop.eup %1418 }
0x1102   :  { %865 = vrot.lane.b32.xlu0 %v1419_v17, %s1458_s19 }
0x1103   :  { %v1421_v19 = vpop.eup %1420 }
0x1104   :  { %v859_v20 = vadd.f32 1.0, %v1421_v19 }
0x1106   :  { %1422 = vrcp.f32 %v859_v20 }
0x1113   :  { %v1423_v21 = vpop.eup %1422 }
0x1114   :  { %v863_v24 = vmul.f32 %v1423_v21, %v773_v55 }
0x1174   :  { %v866_v22 = vpop.permute.xlu0 %865 }
0x1175   :  { %v868_v23 = vmul.f32 %v1423_v21, %v866_v22 }
0x1177   :  { %870 = vrot.lane.b32.xlu1 %v868_v23, %s1458_s19 }
0x11e9   :  { %v871_v25 = vpop.permute.xlu1 %870 }
0x11ea   :  { %v873_v58 = vadd.f32 %v871_v25, %v863_v24 }
0x11ec   :  { %1424 = vtanh.f32 %v873_v58 }
0x11f9   :  { %v1425_v26 = vpop.eup %1424 }
0x11fa   :  { %876 = vrot.lane.b32.xlu0 %v1425_v26, %s1458_s19 }
0x126c   :  { %v877_v27 = vpop.permute.xlu0 %876 }
0x126d   :  { %v879_v28 = vmul.f32 %v1423_v21, %v877_v27 }
0x126f   :  { %881 = vrot.lane.b32.xlu1 %v879_v28, %s1459_s3 }
0x12e1   :  { %v882_v29 = vpop.permute.xlu1 %881 }
0x12e2   :  { %1347 = vmatmul.mubr.msk.f32.vlgmr.msra.gmra.mxu1 %vm181_vm2, %v882_v29 }
0x12e3   :  { %1362 = vmatprep.mubr.msk.f32.mxu1 %vm1457_vm1, %v1456_v3 }
0x13a2   :  { %v951_v31 = vpop.f32.mrf.mxu1 }
0x13a3   :  { %v955_v32 = vadd.f32 %v951_v31, %v178_v30 }
0x13a4   :  { %v1348_v33 = vpop.f32.mrf.mxu1 }
0x13a5   :  { %1426 = vtanh.f32 %v955_v32  ;;  %v1186_v35 = vmul.f32 -1.442695, %v955_v32 }
0x13a7   :  { %1428 = vpow2.f32 %v1186_v35 }
0x13b2   :  { %v1427_v34 = vpop.eup %1426 }
0x13b3   :  { %965 = vrot.lane.b32.xlu0 %v1427_v34, %s1458_s19 }
0x13b4   :  { %v1429_v36 = vpop.eup %1428 }
0x13b5   :  { %v959_v37 = vadd.f32 1.0, %v1429_v36 }
0x13b7   :  { %1430 = vrcp.f32 %v959_v37 }
0x13c4   :  { %v1431_v38 = vpop.eup %1430 }
0x13c5   :  { %v963_v41 = vmul.f32 %v1431_v38, %v873_v58 }
0x1425   :  { %v966_v39 = vpop.permute.xlu0 %965 }
0x1426   :  { %v968_v40 = vmul.f32 %v1431_v38, %v966_v39 }
0x1428   :  { %970 = vrot.lane.b32.xlu1 %v968_v40, %s1458_s19 }
0x149a   :  { %v971_v42 = vpop.permute.xlu1 %970 }
0x149b   :  { %v973_v9 = vadd.f32 %v971_v42, %v963_v41 }
0x149d   :  { %1432 = vtanh.f32 %v973_v9 }
0x14aa   :  { %v1433_v46 = vpop.eup %1432 }
0x14ab   :  { %976 = vrot.lane.b32.xlu0 %v1433_v46, %s1458_s19 }
0x151d   :  { %v977_v47 = vpop.permute.xlu0 %976 }
0x151e   :  { %v979_v48 = vmul.f32 %v1431_v38, %v977_v47 }
0x1520   :  { %992 = vrot.lane.b32.xlu1 %v979_v48, %s1459_s3  ;;  %s1460_s3 = smov [#allocation3]  }
0x1521   :  { %s1155_s20 = sshll.u32 %s1460_s3, 4  ;;  %s1156_s20 = int_to_ptr.vmem [resolvable:$true] %s1155_s20 }
0x1522   :  { %s1434_s5 = scalar_lea.vmem %s1156_s20, 16  ;;  %s1438_s21 = scalar_lea.vmem %s1156_s20, 32 }
0x1523   :  { %p1435_p0 = scmp.ne.s32.totalorder %s1156_s20, %s1434_s5  ;;  %p1439_p1 = scmp.lt.s32.totalorder %s1156_s20, %s1156_s20 }
0x1524   :  { %p1440_p2 = scmp.lt.s32.totalorder %s1438_s21, %s1434_s5 }
0x1526   :  { %p1441_p3 = por %p1440_p2, %p1439_p1 }
0x1528   :  { %p1442_p4 = pnand %p1441_p3, %p1435_p0 }
0x1592   :  { %v993_v49 = vpop.permute.xlu1 %992 }
0x1593   :  { %1358 = vmatmul.mubr.msk.f32.vlgmr.msra.gmra.mxu0 %vm181_vm2, %v993_v49 }
0x1653   :  { %v1062_v51 = vpop.f32.mrf.mxu0 }
0x1654   :  { %v1063_v52 = vadd.f32 %v1187_v50, %v1062_v51 }
0x1655   :  { %v1359_v53 = vpop.f32.mrf.mxu0 }
0x1656   :  { %v1066_v3 = vmax.f32 %v1063_v52, 0.0 }
0x1658   :  { %1361 = vmatpush3.xpose.msk.msra.mxu1 %vm1070_vm3, %v1066_v3 }
0x165b   :  { %1363 = vmatmul.mubr.msk.f32.vlgmr.msra.gmra.mxu1 %vm1070_vm3, %v1067_v54 }
0x171b   :  { %v1143_v56 = vpop.f32.mrf.mxu1 }
0x171c   :  { %v1144_v59 = vadd.f32 %v1143_v56, %v1069_v2 }
0x171d   :  { %v1364_v60 = vpop.f32.mrf.mxu1 }
0x171e   :  { %1148 = vst.msk [vmem:[#allocation3] sm:$0x1] %vm1147_vm4, %v1144_v59 }
0x171f   :  { %1445 = shalt.err (!%p1442_p4)
}
0x1720   :  { %1158 = dma.vmem_to_hbm [thread:$0]  %s1156_s20, 16, %s1748_s8, [#allocation4]  }
0x1721   :  { %1454 = dma.done.wait [#allocation4], 16  }
0x1722   :  { %1455 = vsyncadd [#allocation4], 4294967280 }
0x1723   :  { %1162 = vsyncpa [#allocation4], 1 }

</bundles_post_ra>
